<compile_context>
chip_gen: v7x
topology: tpu7x:2x2x1
jax: 0.10.0
libtpu: 0.0.40
codegen_flags: <defaults>
</compile_context>

<pallas_src>
import functools

import jax
import jax.numpy as jnp
from jax.experimental import pallas as pl
from jax.experimental.pallas import tpu as pltpu


def scse_kernel(u_ref, wsse_ref, wce_ref, w3_ref, w1_ref, mask_ref, seg_ref,
                o_ref, *, W):
    C, N = u_ref.shape                 # channels x fused lanes (Bblk * H * W)
    u = u_ref[...]                     # (C, N) float32, spatial (x batch) on lanes

    # ---- sSE: spatial gate, 1x1 conv C->1 as a (1,C)x(C,N) matmul ----
    q = jax.nn.sigmoid(
        jnp.dot(wsse_ref[...], u, preferred_element_type=jnp.float32))      # (1, N)

    # ---- cSE: channel gate; wce already folds (excite @ squeeze) * (1/HW) ----
    seg = seg_ref[...]                                                       # (Bblk, N)
    zsum = jax.lax.dot_general(u, seg, (((1,), (1,)), ((), ())),
                               preferred_element_type=jnp.float32)           # (C, Bblk)
    z = jax.nn.sigmoid(
        jnp.dot(wce_ref[...], zsum, preferred_element_type=jnp.float32))     # (C, Bblk)
    z_exp = jnp.dot(z, seg, preferred_element_type=jnp.float32)              # (C, N)

    # ---- fuse the two gates: u*q + u*z == u*(q+z) (saves a full (C,N) VPU mul) ----
    s = u * (q + z_exp)                                                      # (C, N)

    # ---- BR: 3x3 conv (pad=1) as ONE (Cout,9C)x(9C,N) matmul over rolled taps ----
    masks = mask_ref[...]                                                    # (9, N)
    taps = []
    for k in range(9):
        dy, dx = k // 3, k % 3
        delta = (dy - 1) * W + (dx - 1)          # flat-index offset of this tap
        if delta == 0:
            t = s                                # center tap: no roll, no mask
        else:
            # rolled[i] = s[(i + delta) mod N]; every cross-image / wrapped source
            # position is zeroed by the precomputed border mask.
            t = pltpu.roll(s, (-delta) % N, 1)
            t = t * masks[k:k + 1, :]
        taps.append(t)
    patches = jnp.concatenate(taps, axis=0)                                  # (9C, N)

    h3 = jnp.dot(w3_ref[...], patches, preferred_element_type=jnp.float32)   # (Cout, N)
    h3 = jnp.maximum(h3, 0.0)                                                # ReLU
    out = jnp.dot(w1_ref[...], h3, preferred_element_type=jnp.float32)       # (Cout, N)
    o_ref[...] = out.astype(o_ref.dtype)


def _pick_batch_block(B, HW, *, max_lanes=2048):
    """Largest divisor of B with Bblk*HW <= max_lanes (keeps patches tile small)."""
    best = 1
    for d in range(1, B + 1):
        if B % d == 0 and d * HW <= max_lanes:
            best = d
    return best


def scse_forward(u_nchw, w_sse, w_sq, w_ex, w3, w1):
    """u_nchw: (B, C, H, W). Weights in PyTorch OIHW layout. Returns (B, Cout, H, W)."""
    B, C, H, W = u_nchw.shape
    Cout = w3.shape[0]
    HW = H * W

    Bblk = _pick_batch_block(B, HW)
    G = B // Bblk                      # grid extent (kept "parallel" for v7x megacore)
    N = Bblk * HW

    # (B, C, H, W) -> (G, C, Bblk*HW): Bblk images fused along the lane axis.
    u = (u_nchw.astype(jnp.float32)
         .reshape(G, Bblk, C, HW)
         .transpose(0, 2, 1, 3)
         .reshape(G, C, N))

    wsse = w_sse[:, :, 0, 0].astype(jnp.float32)                             # (1, C)
    # Collapse squeeze->excite (no nonlinearity between them) and fold in 1/HW.
    wce = (w_ex[:, :, 0, 0].astype(jnp.float32)
           @ w_sq[:, :, 0, 0].astype(jnp.float32)) * (1.0 / HW)              # (C, C)
    # (Cout, C, 3, 3) -> (Cout, 9*C); column = (dy*3+dx)*C + c (matches tap order).
    w3m = jnp.transpose(w3, (0, 2, 3, 1)).reshape(Cout, 9 * C).astype(jnp.float32)
    w1m = w1[:, :, 0, 0].astype(jnp.float32)                                 # (Cout, Cout)

    # Precomputed 3x3 border masks for the 9 taps, tiled across the fused images.
    row = jnp.arange(HW, dtype=jnp.int32) // W
    col = jnp.arange(HW, dtype=jnp.int32) % W
    mask_rows = []
    for dy in range(3):
        for dx in range(3):
            m = jnp.ones((HW,), jnp.float32)
            if dy == 0:
                m = m * (row >= 1)
            elif dy == 2:
                m = m * (row <= H - 2)
            if dx == 0:
                m = m * (col >= 1)
            elif dx == 2:
                m = m * (col <= W - 2)
            mask_rows.append(m)
    masks = jnp.tile(jnp.stack(mask_rows, axis=0), (1, Bblk))                # (9, N)

    # One-hot segment matrix: seg[b, lane] = 1 iff lane belongs to image b.
    seg = jnp.kron(jnp.eye(Bblk, dtype=jnp.float32),
                   jnp.ones((1, HW), jnp.float32))                           # (Bblk, N)

    kernel = functools.partial(scse_kernel, W=W)

    cost = pl.CostEstimate(
        flops=2 * B * HW * (Cout * 9 * C + Cout * Cout + C) + 2 * B * C * C,
        transcendentals=B * (HW + C),
        bytes_accessed=4 * (B * (C + Cout) * HW + Cout * 9 * C + Cout * Cout
                            + C + C * C + 9 * N + Bblk * N),
    )

    out = pl.pallas_call(
        kernel,
        out_shape=jax.ShapeDtypeStruct((G, Cout, N), jnp.float32),
        grid_spec=pltpu.PrefetchScalarGridSpec(
            num_scalar_prefetch=0,
            grid=(G,),
            in_specs=[
                pl.BlockSpec((None, C, N), lambda g: (g, 0, 0)),   # u (squeezed lead dim)
                pl.BlockSpec((1, C), lambda g: (0, 0)),            # sSE weight
                pl.BlockSpec((C, C), lambda g: (0, 0)),            # fused cSE weight
                pl.BlockSpec((Cout, 9 * C), lambda g: (0, 0)),     # 3x3 conv weight
                pl.BlockSpec((Cout, Cout), lambda g: (0, 0)),      # final 1x1 weight
                pl.BlockSpec((9, N), lambda g: (0, 0)),            # border masks
                pl.BlockSpec((Bblk, N), lambda g: (0, 0)),         # segment one-hot
            ],
            out_specs=pl.BlockSpec((None, Cout, N), lambda g: (g, 0, 0)),
        ),
        compiler_params=pltpu.CompilerParams(
            dimension_semantics=("parallel",)),   # independent steps -> megacore on v7x
        cost_estimate=cost,
    )(u, wsse, wce, w3m, w1m, masks, seg)

    # (G, Cout, Bblk*HW) -> (B, Cout, H, W)
    return (out.reshape(G, Cout, Bblk, HW)
               .transpose(0, 2, 1, 3)
               .reshape(B, Cout, H, W))


def scse_reference(u, w_sse, w_sq, w_ex, w3, w1):
    """Pure-JAX NCHW reference mirroring the PyTorch module semantics."""
    def conv(x, w, pad):
        return jax.lax.conv_general_dilated(
            x, w, (1, 1), pad, dimension_numbers=("NCHW", "OIHW", "NCHW"))

    q = jax.nn.sigmoid(conv(u, w_sse, "VALID"))          # sSE spatial gate
    u_sse = u * q
    z = jnp.mean(u, axis=(2, 3), keepdims=True)          # adaptive avg pool (1,1)
    z = conv(z, w_sq, "VALID")
    z = conv(z, w_ex, "VALID")
    z = jax.nn.sigmoid(z)
    u_cse = u * z
    s = u_cse + u_sse
    h = conv(s, w3, ((1, 1), (1, 1)))                    # 3x3, padding=1
    h = jnp.maximum(h, 0.0)
    return conv(h, w1, "VALID")                          # final 1x1


if __name__ == "__main__":
    B, C, H, W = 2, 8, 16, 16
    Cout = 8
    Chalf = C // 2

    key = jax.random.PRNGKey(0)
    k_u, k1, k2, k3, k4, k5 = jax.random.split(key, 6)

    U = jax.random.normal(k_u, (B, C, H, W), dtype=jnp.float32)
    # Deterministic synthetic parameters (PyTorch OIHW conv weight shapes).
    w_sse = 0.2 * jax.random.normal(k1, (1, C, 1, 1), dtype=jnp.float32)
    w_sq = 0.2 * jax.random.normal(k2, (Chalf, C, 1, 1), dtype=jnp.float32)
    w_ex = 0.2 * jax.random.normal(k3, (C, Chalf, 1, 1), dtype=jnp.float32)
    w3 = 0.1 * jax.random.normal(k4, (Cout, C, 3, 3), dtype=jnp.float32)
    w1 = 0.1 * jax.random.normal(k5, (Cout, Cout, 1, 1), dtype=jnp.float32)

    out = jax.block_until_ready(scse_forward(U, w_sse, w_sq, w_ex, w3, w1))
    ref = jax.block_until_ready(scse_reference(U, w_sse, w_sq, w_ex, w3, w1))

    assert out.shape == (B, Cout, H, W), out.shape
    err = float(jnp.max(jnp.abs(out - ref)))
    assert jnp.allclose(out, ref, atol=1e-4, rtol=1e-4), err

    print("KERNEL_OK")
</pallas_src>

<mosaic_0001>
module attributes {stable_mosaic.version = 11 : i64} {
  func.func @scse_kernel(%arg0: i32, %arg1: memref<1x8x512xf32, #tpu.memory_space<vmem>>, %arg2: memref<1x8xf32, #tpu.memory_space<vmem>>, %arg3: memref<8x8xf32, #tpu.memory_space<vmem>>, %arg4: memref<8x72xf32, #tpu.memory_space<vmem>>, %arg5: memref<8x8xf32, #tpu.memory_space<vmem>>, %arg6: memref<9x512xf32, #tpu.memory_space<vmem>>, %arg7: memref<2x512xf32, #tpu.memory_space<vmem>>, %arg8: memref<1x8x512xf32, #tpu.memory_space<vmem>>) attributes {dimension_semantics = [#tpu.dimension_semantics<parallel>], iteration_bounds = array<i64: 1>, scalar_prefetch = 0 : i64, scratch_operands = 0 : i64, tpu.core_type = #tpu.core_type<tc>, window_params = [{transform_indices = @transform_0, window_bounds = array<i64: 1, 8, 512>}, {pipeline_mode = #tpu.pipeline_mode<synchronous>, transform_indices = @transform_1, window_bounds = array<i64: 1, 8>}, {pipeline_mode = #tpu.pipeline_mode<synchronous>, transform_indices = @transform_2, window_bounds = array<i64: 8, 8>}, {pipeline_mode = #tpu.pipeline_mode<synchronous>, transform_indices = @transform_3, window_bounds = array<i64: 8, 72>}, {pipeline_mode = #tpu.pipeline_mode<synchronous>, transform_indices = @transform_4, window_bounds = array<i64: 8, 8>}, {pipeline_mode = #tpu.pipeline_mode<synchronous>, transform_indices = @transform_5, window_bounds = array<i64: 9, 512>}, {pipeline_mode = #tpu.pipeline_mode<synchronous>, transform_indices = @transform_6, window_bounds = array<i64: 2, 512>}, {transform_indices = @transform_7, window_bounds = array<i64: 1, 8, 512>}]} {
    %c0 = arith.constant 0 : index
    %c0_0 = arith.constant 0 : index
    %c0_1 = arith.constant 0 : index
    %0 = vector.load %arg1[%c0, %c0_0, %c0_1] : memref<1x8x512xf32, #tpu.memory_space<vmem>>, vector<1x8x512xf32>
    %1 = vector.shape_cast %0 : vector<1x8x512xf32> to vector<8x512xf32>
    %c0_2 = arith.constant 0 : index
    %c0_3 = arith.constant 0 : index
    %2 = vector.load %arg2[%c0_2, %c0_3] : memref<1x8xf32, #tpu.memory_space<vmem>>, vector<1x8xf32>
    %cst = arith.constant dense<0.000000e+00> : vector<1x512xf32>
    %3 = tpu.matmul %2, %1, %cst {dimension_numbers = #tpu.dot_dimension_numbers<[1], [0], [0], [1], [0, 0, 1, 1], [], []>} : vector<1x8xf32>, vector<8x512xf32>, vector<1x512xf32> -> vector<1x512xf32>
    %4 = arith.negf %3 : vector<1x512xf32>
    %5 = math.exp %4 : vector<1x512xf32>
    %cst_4 = arith.constant 1.000000e+00 : f32
    %6 = vector.broadcast %cst_4 : f32 to vector<1x512xf32>
    %7 = arith.addf %6, %5 : vector<1x512xf32>
    %8 = arith.divf %6, %7 : vector<1x512xf32>
    %c0_5 = arith.constant 0 : index
    %c0_6 = arith.constant 0 : index
    %9 = vector.load %arg7[%c0_5, %c0_6] : memref<2x512xf32, #tpu.memory_space<vmem>>, vector<2x512xf32>
    %cst_7 = arith.constant dense<0.000000e+00> : vector<8x2xf32>
    %10 = tpu.matmul %1, %9, %cst_7 {dimension_numbers = #tpu.dot_dimension_numbers<[1], [1], [0], [0], [0, 0, 1, 0], [], []>} : vector<8x512xf32>, vector<2x512xf32>, vector<8x2xf32> -> vector<8x2xf32>
    %c0_8 = arith.constant 0 : index
    %c0_9 = arith.constant 0 : index
    %11 = vector.load %arg3[%c0_8, %c0_9] : memref<8x8xf32, #tpu.memory_space<vmem>>, vector<8x8xf32>
    %cst_10 = arith.constant dense<0.000000e+00> : vector<8x2xf32>
    %12 = tpu.matmul %11, %10, %cst_10 {dimension_numbers = #tpu.dot_dimension_numbers<[1], [0], [0], [1], [0, 0, 1, 1], [], []>} : vector<8x8xf32>, vector<8x2xf32>, vector<8x2xf32> -> vector<8x2xf32>
    %13 = arith.negf %12 : vector<8x2xf32>
    %14 = math.exp %13 : vector<8x2xf32>
    %cst_11 = arith.constant 1.000000e+00 : f32
    %15 = vector.broadcast %cst_11 : f32 to vector<8x2xf32>
    %16 = arith.addf %15, %14 : vector<8x2xf32>
    %17 = arith.divf %15, %16 : vector<8x2xf32>
    %cst_12 = arith.constant dense<0.000000e+00> : vector<8x512xf32>
    %18 = tpu.matmul %17, %9, %cst_12 {dimension_numbers = #tpu.dot_dimension_numbers<[1], [0], [0], [1], [0, 0, 1, 1], [], []>} : vector<8x2xf32>, vector<2x512xf32>, vector<8x512xf32> -> vector<8x512xf32>
    %19 = vector.broadcast %8 : vector<1x512xf32> to vector<8x512xf32>
    %20 = arith.addf %19, %18 : vector<8x512xf32>
    %21 = arith.mulf %1, %20 : vector<8x512xf32>
    %c0_13 = arith.constant 0 : index
    %c0_14 = arith.constant 0 : index
    %22 = vector.load %arg6[%c0_13, %c0_14] : memref<9x512xf32, #tpu.memory_space<vmem>>, vector<9x512xf32>
    %c17_i32 = arith.constant 17 : i32
    %23 = tpu.dynamic_rotate %21 by %c17_i32 dim 1 : vector<8x512xf32>, i32 -> vector<8x512xf32>
    %24 = vector.extract_strided_slice %22 {offsets = [0, 0], sizes = [1, 512], strides = [1, 1]} : vector<9x512xf32> to vector<1x512xf32>
    %25 = vector.broadcast %24 : vector<1x512xf32> to vector<8x512xf32>
    %26 = arith.mulf %23, %25 : vector<8x512xf32>
    %c16_i32 = arith.constant 16 : i32
    %27 = tpu.dynamic_rotate %21 by %c16_i32 dim 1 : vector<8x512xf32>, i32 -> vector<8x512xf32>
    %28 = vector.extract_strided_slice %22 {offsets = [1, 0], sizes = [1, 512], strides = [1, 1]} : vector<9x512xf32> to vector<1x512xf32>
    %29 = vector.broadcast %28 : vector<1x512xf32> to vector<8x512xf32>
    %30 = arith.mulf %27, %29 : vector<8x512xf32>
    %c15_i32 = arith.constant 15 : i32
    %31 = tpu.dynamic_rotate %21 by %c15_i32 dim 1 : vector<8x512xf32>, i32 -> vector<8x512xf32>
    %32 = vector.extract_strided_slice %22 {offsets = [2, 0], sizes = [1, 512], strides = [1, 1]} : vector<9x512xf32> to vector<1x512xf32>
    %33 = vector.broadcast %32 : vector<1x512xf32> to vector<8x512xf32>
    %34 = arith.mulf %31, %33 : vector<8x512xf32>
    %c1_i32 = arith.constant 1 : i32
    %35 = tpu.dynamic_rotate %21 by %c1_i32 dim 1 : vector<8x512xf32>, i32 -> vector<8x512xf32>
    %36 = vector.extract_strided_slice %22 {offsets = [3, 0], sizes = [1, 512], strides = [1, 1]} : vector<9x512xf32> to vector<1x512xf32>
    %37 = vector.broadcast %36 : vector<1x512xf32> to vector<8x512xf32>
    %38 = arith.mulf %35, %37 : vector<8x512xf32>
    %c511_i32 = arith.constant 511 : i32
    %39 = tpu.dynamic_rotate %21 by %c511_i32 dim 1 : vector<8x512xf32>, i32 -> vector<8x512xf32>
    %40 = vector.extract_strided_slice %22 {offsets = [5, 0], sizes = [1, 512], strides = [1, 1]} : vector<9x512xf32> to vector<1x512xf32>
    %41 = vector.broadcast %40 : vector<1x512xf32> to vector<8x512xf32>
    %42 = arith.mulf %39, %41 : vector<8x512xf32>
    %c497_i32 = arith.constant 497 : i32
    %43 = tpu.dynamic_rotate %21 by %c497_i32 dim 1 : vector<8x512xf32>, i32 -> vector<8x512xf32>
    %44 = vector.extract_strided_slice %22 {offsets = [6, 0], sizes = [1, 512], strides = [1, 1]} : vector<9x512xf32> to vector<1x512xf32>
    %45 = vector.broadcast %44 : vector<1x512xf32> to vector<8x512xf32>
    %46 = arith.mulf %43, %45 : vector<8x512xf32>
    %c496_i32 = arith.constant 496 : i32
    %47 = tpu.dynamic_rotate %21 by %c496_i32 dim 1 : vector<8x512xf32>, i32 -> vector<8x512xf32>
    %48 = vector.extract_strided_slice %22 {offsets = [7, 0], sizes = [1, 512], strides = [1, 1]} : vector<9x512xf32> to vector<1x512xf32>
    %49 = vector.broadcast %48 : vector<1x512xf32> to vector<8x512xf32>
    %50 = arith.mulf %47, %49 : vector<8x512xf32>
    %c495_i32 = arith.constant 495 : i32
    %51 = tpu.dynamic_rotate %21 by %c495_i32 dim 1 : vector<8x512xf32>, i32 -> vector<8x512xf32>
    %52 = vector.extract_strided_slice %22 {offsets = [8, 0], sizes = [1, 512], strides = [1, 1]} : vector<9x512xf32> to vector<1x512xf32>
    %53 = vector.broadcast %52 : vector<1x512xf32> to vector<8x512xf32>
    %54 = arith.mulf %51, %53 : vector<8x512xf32>
    %55 = tpu.concatenate %26, %30, %34, %38, %21, %42, %46, %50, %54 in 0 : vector<8x512xf32>, vector<8x512xf32>, vector<8x512xf32>, vector<8x512xf32>, vector<8x512xf32>, vector<8x512xf32>, vector<8x512xf32>, vector<8x512xf32>, vector<8x512xf32> -> vector<72x512xf32>
    %c0_15 = arith.constant 0 : index
    %c0_16 = arith.constant 0 : index
    %56 = vector.load %arg4[%c0_15, %c0_16] : memref<8x72xf32, #tpu.memory_space<vmem>>, vector<8x72xf32>
    %cst_17 = arith.constant dense<0.000000e+00> : vector<8x512xf32>
    %57 = tpu.matmul %56, %55, %cst_17 {dimension_numbers = #tpu.dot_dimension_numbers<[1], [0], [0], [1], [0, 0, 1, 1], [], []>} : vector<8x72xf32>, vector<72x512xf32>, vector<8x512xf32> -> vector<8x512xf32>
    %cst_18 = arith.constant 0.000000e+00 : f32
    %58 = vector.broadcast %cst_18 : f32 to vector<8x512xf32>
    %59 = arith.maximumf %57, %58 : vector<8x512xf32>
    %c0_19 = arith.constant 0 : index
    %c0_20 = arith.constant 0 : index
    %60 = vector.load %arg5[%c0_19, %c0_20] : memref<8x8xf32, #tpu.memory_space<vmem>>, vector<8x8xf32>
    %cst_21 = arith.constant dense<0.000000e+00> : vector<8x512xf32>
    %61 = tpu.matmul %60, %59, %cst_21 {dimension_numbers = #tpu.dot_dimension_numbers<[1], [0], [0], [1], [0, 0, 1, 1], [], []>} : vector<8x8xf32>, vector<8x512xf32>, vector<8x512xf32> -> vector<8x512xf32>
    %c0_22 = arith.constant 0 : index
    %c0_23 = arith.constant 0 : index
    %c0_24 = arith.constant 0 : index
    %62 = vector.load %arg8[%c0_22, %c0_23, %c0_24] : memref<1x8x512xf32, #tpu.memory_space<vmem>>, vector<1x8x512xf32>
    %63 = vector.shape_cast %62 : vector<1x8x512xf32> to vector<8x512xf32>
    %64 = vector.shape_cast %61 : vector<8x512xf32> to vector<1x8x512xf32>
    tpu.vector_store %arg8[%c0_22, %c0_23, %c0_24], %64 {strides = array<i32>} : memref<1x8x512xf32, #tpu.memory_space<vmem>>, vector<1x8x512xf32>,
    return
  }
  func.func @transform_0(%arg0: i32) -> (i32, i32, i32) {
    %c0_i32 = arith.constant 0 : i32
    %c0_i32_0 = arith.constant 0 : i32
    %c0_i32_1 = arith.constant 0 : i32
    return %arg0, %c0_i32, %c0_i32_0 : i32, i32, i32
  }
  func.func @transform_1(%arg0: i32) -> (i32, i32) {
    %c0_i32 = arith.constant 0 : i32
    %c0_i32_0 = arith.constant 0 : i32
    %c0_i32_1 = arith.constant 0 : i32
    return %c0_i32, %c0_i32_0 : i32, i32
  }
  func.func @transform_2(%arg0: i32) -> (i32, i32) {
    %c0_i32 = arith.constant 0 : i32
    %c0_i32_0 = arith.constant 0 : i32
    %c0_i32_1 = arith.constant 0 : i32
    return %c0_i32, %c0_i32_0 : i32, i32
  }
  func.func @transform_3(%arg0: i32) -> (i32, i32) {
    %c0_i32 = arith.constant 0 : i32
    %c0_i32_0 = arith.constant 0 : i32
    %c0_i32_1 = arith.constant 0 : i32
    return %c0_i32, %c0_i32_0 : i32, i32
  }
  func.func @transform_4(%arg0: i32) -> (i32, i32) {
    %c0_i32 = arith.constant 0 : i32
    %c0_i32_0 = arith.constant 0 : i32
    %c0_i32_1 = arith.constant 0 : i32
    return %c0_i32, %c0_i32_0 : i32, i32
  }
  func.func @transform_5(%arg0: i32) -> (i32, i32) {
    %c0_i32 = arith.constant 0 : i32
    %c0_i32_0 = arith.constant 0 : i32
    %c0_i32_1 = arith.constant 0 : i32
    return %c0_i32, %c0_i32_0 : i32, i32
  }
  func.func @transform_6(%arg0: i32) -> (i32, i32) {
    %c0_i32 = arith.constant 0 : i32
    %c0_i32_0 = arith.constant 0 : i32
    %c0_i32_1 = arith.constant 0 : i32
    return %c0_i32, %c0_i32_0 : i32, i32
  }
  func.func @transform_7(%arg0: i32) -> (i32, i32, i32) {
    %c0_i32 = arith.constant 0 : i32
    %c0_i32_0 = arith.constant 0 : i32
    %c0_i32_1 = arith.constant 0 : i32
    return %arg0, %c0_i32, %c0_i32_0 : i32, i32, i32
  }
}

</mosaic_0001>

<bundles_post_ra>
// kernel: tpu_custom_call.1
= control target key start
LH: loop header
LB: loop body
LE: loop exit
PB: predicated region body
PF: predicated region fallthrough
CT: control target
= control target key end

     0   :  { %12 = vsyncpa [#allocation3], 0  ;;  %s1895_s0 = inlined_call_operand.hbm [shape: f32[1,8,512], index: 0, kind: input, shape index: {}]   ;;  %s1896_s1 = inlined_call_operand.vmem [shape: f32[1,8], index: 1, kind: input, shape index: {}]   ;;  %s1897_s2 = inlined_call_operand.hbm [shape: f32[8,8], index: 2, kind: input, shape index: {}]   ;;  %s1898_s3 = inlined_call_operand.vmem [shape: f32[8,72], index: 3, kind: input, shape index: {}]   ;;  %s1899_s4 = inlined_call_operand.hbm [shape: f32[8,8], index: 4, kind: input, shape index: {}]   ;;  %s1900_s5 = inlined_call_operand.hbm [shape: f32[9,512], index: 5, kind: input, shape index: {}]   ;;  %s1901_s6 = inlined_call_operand.vmem [shape: f32[2,512], index: 6, kind: input, shape index: {}]   ;;  %s1902_s7 = inlined_call_operand.hbm [shape: f32[1,8,512], index: 7, kind: output, shape index: {}]  }
   0x1   :  { %13 = vsyncpa [#allocation6], 0 }
   0x2   :  { %14 = vsyncpa [#allocation9], 0 }
   0x3   :  { %15 = vsyncpa [#allocation4], 0  ;;  %s1485_s24 = smov [#allocation5]   ;;  %s1486_s26 = smov [#allocation2]  }
   0x4   :  { %s34_s25 = sshll.u32 %s1485_s24, 4  ;;  %s22_s27 = sshll.u32 %s1486_s26, 4  ;;  %s35_s25 = int_to_ptr.vmem [resolvable:$true] %s34_s25  ;;  %s23_s27 = int_to_ptr.vmem [resolvable:$true] %s22_s27 }
   0x5   :  { %s1367_s30 = scalar_lea.hbm %s1897_s2, 128 }
   0x6   :  { %p1368_p0 = scmp.ne.s32.totalorder %s1897_s2, %s1367_s30  ;;  %p1371_p1 = scmp.lt.u32.totalorder %s1367_s30, %s1897_s2 }
   0x8   :  { %p1373_p2 = pnand %p1371_p1, %p1368_p0 }
   0xa   :  { %1376 = shalt.err (!%p1373_p2)
}
   0xb   :  { %s1377_s12 = scalar_lea.vmem %s35_s25, 128  ;;  %p1382_p4 = scmp.lt.s32.totalorder %s35_s25, %s35_s25 }
   0xc   :  { %p1378_p3 = scmp.ne.s32.totalorder %s35_s25, %s1377_s12  ;;  %p1383_p5 = scmp.lt.s32.totalorder %s1377_s12, %s1377_s12 }
   0xe   :  { %p1384_p6 = por %p1383_p5, %p1382_p4 }
  0x10   :  { %p1385_p7 = pnand %p1384_p6, %p1378_p3 }
  0x12   :  { %1388 = shalt.err (!%p1385_p7)
}
  0x13   :  { %37 = dma.hbm_to_vmem [thread:$0]  %s1897_s2, 128, %s35_s25, [#allocation6]  }
  0x14   :  { %s1389_s17 = scalar_lea.hbm %s1895_s0, 512 }
  0x15   :  { %p1390_p8 = scmp.ne.s32.totalorder %s1895_s0, %s1389_s17  ;;  %p1393_p9 = scmp.lt.u32.totalorder %s1389_s17, %s1895_s0 }
  0x17   :  { %p1395_p10 = pnand %p1393_p9, %p1390_p8 }
  0x19   :  { %1398 = shalt.err (!%p1395_p10)
}
  0x1a   :  { %s1399_s22 = scalar_lea.vmem %s23_s27, 512  ;;  %p1404_p12 = scmp.lt.s32.totalorder %s23_s27, %s23_s27 }
  0x1b   :  { %p1400_p11 = scmp.ne.s32.totalorder %s23_s27, %s1399_s22  ;;  %p1405_p13 = scmp.lt.s32.totalorder %s1399_s22, %s1399_s22 }
  0x1d   :  { %p1406_p0 = por %p1405_p13, %p1404_p12 }
  0x1f   :  { %p1407_p1 = pnand %p1406_p0, %p1400_p11 }
  0x21   :  { %1410 = shalt.err (!%p1407_p1)
}
  0x22   :  { %25 = dma.hbm_to_vmem [thread:$0]  %s1895_s0, 512, %s23_s27, [#allocation3]  }
  0x23   :  { %s1487_s24 = smov [#allocation7]   ;;  %s1488_s26 = smov [#allocation8]  }
  0x24   :  { %s46_s25 = sshll.u32 %s1487_s24, 4  ;;  %s55_s28 = sshll.u32 %s1488_s26, 4  ;;  %s47_s25 = int_to_ptr.vmem [resolvable:$true] %s46_s25  ;;  %s1567_s28 = int_to_ptr.vmem [resolvable:$true] %s55_s28 }
  0x25   :  { %s1411_s8 = scalar_lea.hbm %s1899_s4, 128 }
  0x26   :  { %p1412_p2 = scmp.ne.s32.totalorder %s1899_s4, %s1411_s8  ;;  %p1415_p3 = scmp.lt.u32.totalorder %s1411_s8, %s1899_s4 }
  0x28   :  { %p1417_p4 = pnand %p1415_p3, %p1412_p2 }
  0x2a   :  { %1420 = shalt.err (!%p1417_p4)
}
  0x2b   :  { %s1421_s0 = scalar_lea.vmem %s47_s25, 128  ;;  %p1426_p6 = scmp.lt.s32.totalorder %s47_s25, %s47_s25 }
  0x2c   :  { %p1422_p5 = scmp.ne.s32.totalorder %s47_s25, %s1421_s0  ;;  %p1427_p7 = scmp.lt.s32.totalorder %s1421_s0, %s1421_s0 }
  0x2e   :  { %p1428_p8 = por %p1427_p7, %p1426_p6 }
  0x30   :  { %p1429_p9 = pnand %p1428_p8, %p1422_p5 }
  0x32   :  { %1432 = shalt.err (!%p1429_p9)
}
  0x33   :  { %49 = dma.hbm_to_vmem [thread:$0]  %s1899_s4, 128, %s47_s25, [#allocation6]  }
  0x34   :  { %s1433_s16 = scalar_lea.hbm %s1900_s5, 1024 }
  0x35   :  { %p1434_p10 = scmp.ne.s32.totalorder %s1900_s5, %s1433_s16  ;;  %p1437_p11 = scmp.lt.u32.totalorder %s1433_s16, %s1900_s5 }
  0x37   :  { %p1439_p12 = pnand %p1437_p11, %p1434_p10 }
  0x39   :  { %1442 = shalt.err (!%p1439_p12)
}
  0x3a   :  { %s1443_s21 = scalar_lea.vmem %s1567_s28, 1024  ;;  %p1448_p0 = scmp.lt.s32.totalorder %s1567_s28, %s1567_s28 }
  0x3b   :  { %p1444_p13 = scmp.ne.s32.totalorder %s1567_s28, %s1443_s21  ;;  %p1449_p1 = scmp.lt.s32.totalorder %s1443_s21, %s1443_s21 }
  0x3d   :  { %p1450_p2 = por %p1449_p1, %p1448_p0 }
  0x3f   :  { %p1451_p3 = pnand %p1450_p2, %p1444_p13 }
  0x41   :  { %1454 = shalt.err (!%p1451_p3)
}
  0x42   :  { %s1489_s4 = smov 512   ;;  %s1490_s22 = smov 32  }
  0x43   :  { %61 = dma.hbm_to_vmem [thread:$0]  %s1900_s5, 1024, %s1567_s28, [#allocation9], %s1489_s4, %s1489_s4, %s1490_s22  }
  0x44   :  { %1477 = dma.done.wait [#allocation3], 512  }
  0x45   :  { %1478 = vsyncadd [#allocation3], 4294966784 }
  0x46   :  { %1479 = dma.done.wait [#allocation6], 256  }
  0x47   :  { %1480 = vsyncadd [#allocation6], 4294967040 }
  0x48   :  { %1481 = dma.done.wait [#allocation9], 1024  }
  0x49   :  { %1482 = vsyncadd [#allocation9], 4294966272  ;;  %v257_v0 = vlaneseq  ;;  %v1491_v1 = vmov 0.0   ;;  %v1492_v2 = vmov 1983009808   ;;  %v1604_v7 = vld [vmem:[#allocation2 + $0x8] sm:$0xff] }
  0x4a   :  { %149 = vmatprep.mubr.f32.mxu0 %v1491_v1  ;;  %v255_v3 = vunpack.c.l.s4 %v1492_v2  ;;  %220 = vmatprep.mubr.f32.mxu1 %v1491_v1  ;;  %v1606_v8 = vld [vmem:[#allocation2] sm:$0xff]  ;;  %vm81_vm0 = vcmask 64512   ;;  %v1615_v11 = vld [vmem:[#allocation2 + $0x18] sm:$0xff]  ;;  %v1618_v14 = vld [vmem:[#allocation2 + $0x10] sm:$0xff]  ;;  %vm1493_vm1 = vmmov 0   ;;  %vm498_vm2 = vcmask 1041408  }
  0x4b   :  { %v1601_v4 = vshrl.u32 %v257_v0, 7  ;;  %v80_v9 = vld [vmem:[%s1896_s1] sm:$0x1]  ;;  %85 = vmatprep.subr.mxu0 %v1604_v7  ;;  %156 = vmatprep.subr.mxu1 %v1615_v11  ;;  %vm494_vm3 = vcmask 15360   ;;  %s1494_s1 = smov 17   ;;  %s1496_s28 = smov 15  }
  0x4c   :  { %v256_v5 = vunpack.c.0.s8 %v255_v3  ;;  %v251_v10 = vld [vmem:[%s1901_s6] sm:$0xff]  ;;  %86 = vmatpush1.msra.mxu0 %v1606_v8  ;;  %157 = vmatpush1.msra.mxu1 %v1618_v14  ;;  %s1495_s6 = smov 16   ;;  %s1497_s29 = smov 1   ;;  %vm948_vm12 = vcmask 588800  }
  0x4d   :  { %v253_v13 = vcombine.high %v251_v10, %v251_v10  ;;  %1265 = vmatmul.mubr.msk.f32.vlgmr.msra.gmra.mrb[0].mxu0 %vm81_vm0, %v80_v9  ;;  %1266 = vmatmul.mubr.msk.f32.vlgmr.msra.gmra.mrb[0].mxu1 %vm81_vm0, %v80_v9  ;;  %v414_v22 = vld [vmem:[#allocation5] sm:$0xff]  ;;  %v1636_v45 = vsub.s32 0, %v1601_v4  ;;  %s1498_s30 = smov 127   ;;  %s1499_s8 = smov 113  }
  0x4e   :  { %v259_v6 = vsub.s32 %v256_v5, %v1601_v4  ;;  %338 = vmatprep.mubr.f32.mxu0 %v1604_v7  ;;  %1289 = vmatprep.subr.mxu1 %v1491_v1  ;;  %s1500_s9 = smov 112   ;;  %s1501_s10 = smov 111  }
  0x4f   :  { %1291 = vmatprep.mubr.msk.f32.mxu1 %vm1493_vm1, %v1491_v1 }
  0x50   :  { %v260_v12 = vrot.slane %v251_v10, %v259_v6  ;;  %v267_v16 = vrot.slane %v253_v13, %v259_v6  ;;  %v1691_v6 = vand.u32 127, %v257_v0  ;;  %v1697_v10 = vsub.s32 1, %v1601_v4 }
  0x52   :  { %v268_v15 = vcombine.high %v260_v12, %v260_v12  ;;  %v269_v17 = vcombine.high %v267_v16, %v267_v16  ;;  %vm691_vm4 = vcmp.lt.s32.totalorder %v1691_v6, 17  ;;  %vm724_vm5 = vcmp.lt.s32.totalorder %v1691_v6, 16 }
  0x53   :  { %vm757_vm6 = vcmp.lt.s32.totalorder %v1691_v6, 15  ;;  %vm790_vm7 = vcmp.lt.s32.totalorder %v1691_v6, 1  ;;  %vm823_vm8 = vcmp.lt.s32.totalorder %v1691_v6, 127  ;;  %vm856_vm9 = vcmp.lt.s32.totalorder %v1691_v6, 113 }
  0x54   :  { %274 = vmatprep.subr.mxu0 %v268_v15  ;;  %vm889_vm10 = vcmp.lt.s32.totalorder %v1691_v6, 112  ;;  %vm922_vm11 = vcmp.lt.s32.totalorder %v1691_v6, 111  ;;  %v947_v6 = vld [vmem:[%s1898_s3] sm:$0xff]  ;;  %s1502_s3 = smov [#allocation10]  }
  0x55   :  { %275 = vmatpush1.xpose.msra.mxu0 %v260_v12  ;;  %s1254_s0 = sshll.u32 %s1502_s3, 4  ;;  %s1255_s0 = int_to_ptr.vmem [resolvable:$true] %s1254_s0 }
  0x56   :  { %344 = vmatprep.subr.mxu0 %v269_v17  ;;  %s1455_s27 = scalar_lea.vmem %s1255_s0, 512  ;;  %p1460_p5 = scmp.lt.s32.totalorder %s1255_s0, %s1255_s0 }
  0x57   :  { %p1456_p4 = scmp.ne.s32.totalorder %s1255_s0, %s1455_s27  ;;  %p1461_p6 = scmp.lt.s32.totalorder %s1455_s27, %s1455_s27 }
  0x58   :  { %339 = vmatmul.mubr.f32.vlgmr.msra.gmra.mrb[2].mxu0 %v1606_v8 }
  0x59   :  { %345 = vmatpush1.xpose.msra.mxu0 %v267_v16  ;;  %408 = vmatprep.mubr.f32.mxu0 %v1615_v11  ;;  %p1462_p7 = por %p1461_p6, %p1460_p5 }
  0x5a   :  { %1276 = vmatprep.subr.msk.mxu0 %vm498_vm2, %v269_v17 }
  0x5b   :  { %p1463_p8 = pnand %p1462_p7, %p1456_p4 }
  0x60   :  { %409 = vmatmul.mubr.f32.vlgmr.msra.gmra.mrb[2].mxu0 %v1618_v14 }
  0x61   :  { %642 = vmatprep.mubr.f32.mxu0 %v1491_v1  ;;  %1277 = vmatpush1.msk.msra.mxu0 %vm498_vm2, %v267_v16 }
 0x120   :  { %v151_v18 = vpop.f32.mrb[0].mxu0  ;;  %v222_v20 = vpop.f32.mrb[0].mxu1 }
 0x121   :  { %v153_v19 = vpop.f32.mrb[1].mxu0  ;;  %v224_v21 = vpop.f32.mrb[1].mxu1  ;;  %v1267_v31 = vmul.f32 -1.442695, %v151_v18  ;;  %v1269_v33 = vmul.f32 -1.442695, %v222_v20 }
 0x122   :  { %v1268_v32 = vmul.f32 -1.442695, %v153_v19  ;;  %v1270_v34 = vmul.f32 -1.442695, %v224_v21 }
 0x133   :  { %v410_v23 = vpop.f32.mrb[2].mxu0 }
 0x134   :  { %v412_v24 = vpop.f32.mrb[3].mxu0  ;;  %1290 = vmatpush3.msra.mxu1 %v410_v23 }
 0x135   :  { %1292 = vmatmul.mubr.msk.f32.vlgmr.msra.gmra.mrb[2].mxu1 %vm81_vm0, %v414_v22  ;;  %1273 = vmatprep.subr.msk.mxu1 %vm498_vm2, %v268_v15 }
 0x136   :  { %571 = vmatprep.mubr.f32.mxu1 %v1491_v1  ;;  %1274 = vmatpush1.msk.msra.mxu1 %vm498_vm2, %v260_v12 }
 0x208   :  { %v484_v25 = vpop.f32.mrb[2].mxu1 }
 0x209   :  { %v1272_v26 = vmul.f32 -1.442695, %v484_v25  ;;  %v1293_v27 = vpop.f32.mrb[3].mxu1 }
 0x20a   :  { %v1717_v27 = vld [vmem:[#allocation8 + $0x8] sm:$0xff] }
 0x20b   :  { %1347 = vpow2.f32 %v1272_v26  ;;  %v1715_v26 = vld [vmem:[#allocation8] sm:$0xff] }
 0x215   :  { %v1348_v28 = vpop.eup %1347 }
 0x216   :  { %v491_v29 = vadd.f32 1.0, %v1348_v28  ;;  %v1719_v28 = vld [vmem:[#allocation8 + $0x10] sm:$0xff] }
 0x218   :  { %1349 = vrcp.f32 %v491_v29  ;;  %v1722_v29 = vsub.s32 2, %v1601_v4 }
 0x219   :  { %1351 = vpow2.f32 %v1267_v31 }
 0x21a   :  { %1353 = vpow2.f32 %v1268_v32  ;;  %v1727_v32 = vsub.s32 3, %v1601_v4 }
 0x21b   :  { %1355 = vpow2.f32 %v1269_v33  ;;  %v699_v33 = vrot.slane %v1715_v26, %v1636_v45 }
 0x21c   :  { %1357 = vpow2.f32 %v1270_v34  ;;  %v736_v34 = vrot.slane %v1717_v27, %v1697_v10 }
 0x222   :  { %v1350_v30 = vpop.eup %1349 }
 0x223   :  { %1275 = vmatmul.mubr.msk.f32.vlgmr.msra.gmra.mrb[4].mxu1 %vm494_vm3, %v1350_v30  ;;  %1278 = vmatmul.mubr.msk.f32.vlgmr.msra.gmra.mrb[4].mxu0 %vm494_vm3, %v1350_v30  ;;  %v1352_v35 = vpop.eup %1351 }
 0x224   :  { %1016 = vmatprep.mubr.f32.mxu1 %v1491_v1  ;;  %1087 = vmatprep.mubr.f32.mxu0 %v1491_v1  ;;  %v1354_v36 = vpop.eup %1353  ;;  %v239_v39 = vadd.f32 1.0, %v1352_v35  ;;  %v740_v35 = vrot.slane %v1719_v28, %v1697_v10 }
 0x225   :  { %v1356_v37 = vpop.eup %1355  ;;  %v240_v40 = vadd.f32 1.0, %v1354_v36  ;;  %v732_v36 = vrot.slane %v1715_v26, %v1697_v10 }
 0x226   :  { %v1358_v38 = vpop.eup %1357  ;;  %v241_v41 = vadd.f32 1.0, %v1356_v37  ;;  %1359 = vrcp.f32 %v239_v39  ;;  %v1738_v37 = vsub.s32 5, %v1601_v4  ;;  %v769_v39 = vrot.slane %v1717_v27, %v1722_v29 }
 0x227   :  { %v242_v42 = vadd.f32 1.0, %v1358_v38  ;;  %1361 = vrcp.f32 %v240_v40  ;;  %v773_v40 = vrot.slane %v1719_v28, %v1722_v29 }
 0x228   :  { %1363 = vrcp.f32 %v241_v41 }
 0x229   :  { %1365 = vrcp.f32 %v242_v42 }
 0x230   :  { %v1360_v43 = vpop.eup %1359 }
 0x231   :  { %v1362_v44 = vpop.eup %1361  ;;  %v652_v48 = vrot.slane %v1360_v43, %v1636_v45  ;;  %v765_v43 = vrot.slane %v1715_v26, %v1722_v29 }
 0x232   :  { %v1364_v46 = vpop.eup %1363  ;;  %v656_v52 = vrot.slane %v1362_v44, %v1636_v45 }
 0x233   :  { %v1366_v47 = vpop.eup %1365  ;;  %v660_v49 = vrot.slane %v1364_v46, %v1636_v45  ;;  %v802_v46 = vrot.slane %v1717_v27, %v1727_v32 }
 0x234   :  { %v664_v53 = vrot.slane %v1366_v47, %v1636_v45 }
 0x2f6   :  { %v573_v50 = vpop.f32.mrb[4].mxu1  ;;  %v644_v51 = vpop.f32.mrb[4].mxu0 }
 0x2f7   :  { %v665_v54 = vadd.f32 %v652_v48, %v573_v50  ;;  %v667_v55 = vadd.f32 %v660_v49, %v644_v51  ;;  %v575_v56 = vpop.f32.mrb[5].mxu1  ;;  %v646_v57 = vpop.f32.mrb[5].mxu0  ;;  %v806_v48 = vrot.slane %v1719_v28, %v1727_v32  ;;  %v798_v49 = vrot.slane %v1715_v26, %v1727_v32 }
 0x2f8   :  { %v666_v58 = vadd.f32 %v656_v52, %v575_v56  ;;  %v668_v59 = vadd.f32 %v664_v53, %v646_v57  ;;  %v831_v52 = vrot.slane %v1715_v26, %v1738_v37  ;;  %v835_v53 = vrot.slane %v1717_v27, %v1738_v37 }
 0x2f9   :  { %v1643_v60 = vmul.f32 %v665_v54, %v1606_v8  ;;  %v1646_v61 = vmul.f32 %v667_v55, %v1618_v14  ;;  %v1693_v8 = vld [vmem:[#allocation8 + $0x18] sm:$0xff]  ;;  %v839_v57 = vrot.slane %v1719_v28, %v1738_v37 }
 0x2fa   :  { %v1651_v62 = vmul.f32 %v668_v59, %v1615_v11  ;;  %v1656_v63 = vmul.f32 %v666_v58, %v1604_v7  ;;  %v711_v12 = vrot.slane %v1693_v8, %v1636_v45  ;;  %v744_v13 = vrot.slane %v1693_v8, %v1697_v10 }
 0x2fb   :  { %681 = vrot.lane.b32.xlu0 %v1643_v60, %s1494_s1  ;;  %685 = vrot.lane.b32.xlu1 %v1646_v61, %s1494_s1  ;;  %v777_v44 = vrot.slane %v1693_v8, %v1722_v29  ;;  %v810_v50 = vrot.slane %v1693_v8, %v1727_v32  ;;  %v1777_v59 = vsub.s32 6, %v1601_v4  ;;  %v843_v10 = vrot.slane %v1693_v8, %v1738_v37 }
 0x2ff   :  { %716 = vrot.lane.b32.xlu0 %v1643_v60, %s1495_s6  ;;  %687 = vrot.lane.b32.xlu1 %v1651_v62, %s1494_s1 }
 0x303   :  { %720 = vrot.lane.b32.xlu0 %v1646_v61, %s1495_s6  ;;  %718 = vrot.lane.b32.xlu1 %v1656_v63, %s1495_s6 }
 0x307   :  { %749 = vrot.lane.b32.xlu0 %v1643_v60, %s1496_s28  ;;  %722 = vrot.lane.b32.xlu1 %v1651_v62, %s1495_s6 }
 0x30b   :  { %753 = vrot.lane.b32.xlu0 %v1646_v61, %s1496_s28  ;;  %751 = vrot.lane.b32.xlu1 %v1656_v63, %s1496_s28 }
 0x30f   :  { %782 = vrot.lane.b32.xlu0 %v1643_v60, %s1497_s29  ;;  %755 = vrot.lane.b32.xlu1 %v1651_v62, %s1496_s28 }
 0x313   :  { %786 = vrot.lane.b32.xlu0 %v1646_v61, %s1497_s29  ;;  %784 = vrot.lane.b32.xlu1 %v1656_v63, %s1497_s29 }
 0x317   :  { %815 = vrot.lane.b32.xlu0 %v1643_v60, %s1498_s30  ;;  %788 = vrot.lane.b32.xlu1 %v1651_v62, %s1497_s29 }
 0x31b   :  { %819 = vrot.lane.b32.xlu0 %v1646_v61, %s1498_s30  ;;  %817 = vrot.lane.b32.xlu1 %v1656_v63, %s1498_s30 }
 0x31f   :  { %848 = vrot.lane.b32.xlu0 %v1643_v60, %s1499_s8  ;;  %821 = vrot.lane.b32.xlu1 %v1651_v62, %s1498_s30 }
 0x323   :  { %850 = vrot.lane.b32.xlu1 %v1656_v63, %s1499_s8  ;;  %683 = vrot.lane.b32.xlu0 %v1656_v63, %s1494_s1 }
 0x327   :  { %854 = vrot.lane.b32.xlu1 %v1651_v62, %s1499_s8  ;;  %852 = vrot.lane.b32.xlu0 %v1646_v61, %s1499_s8 }
 0x32b   :  { %883 = vrot.lane.b32.xlu1 %v1656_v63, %s1500_s9  ;;  %881 = vrot.lane.b32.xlu0 %v1643_v60, %s1500_s9 }
 0x32f   :  { %887 = vrot.lane.b32.xlu1 %v1651_v62, %s1500_s9  ;;  %885 = vrot.lane.b32.xlu0 %v1646_v61, %s1500_s9 }
 0x333   :  { %916 = vrot.lane.b32.xlu1 %v1656_v63, %s1501_s10  ;;  %914 = vrot.lane.b32.xlu0 %v1643_v60, %s1501_s10 }
 0x337   :  { %920 = vrot.lane.b32.xlu1 %v1651_v62, %s1501_s10  ;;  %918 = vrot.lane.b32.xlu0 %v1646_v61, %s1501_s10 }
 0x36d   :  { %v1686_v2 = vpop.permute.xlu0 %681  ;;  %v1688_v3 = vpop.permute.xlu1 %685 }
 0x371   :  { %v717_v5 = vpop.permute.xlu0 %716  ;;  %v688_v7 = vpop.permute.xlu1 %687 }
 0x372   :  { %v692_v0 = vsel %vm691_vm4, %v1688_v3, %v688_v7  ;;  %v695_v47 = vsel %vm691_vm4, %v688_v7, %v1686_v2 }
 0x373   :  { %v715_v17 = vmul.f32 %v711_v12, %v692_v0  ;;  %v712_v7 = vmul.f32 %v699_v33, %v695_v47  ;;  %v703_v12 = vrot.slane %v1717_v27, %v1636_v45  ;;  %v868_v0 = vrot.slane %v1717_v27, %v1777_v59 }
 0x375   :  { %v721_v9 = vpop.permute.xlu0 %720  ;;  %v719_v11 = vpop.permute.xlu1 %718 }
 0x376   :  { %v726_v54 = vsel %vm724_vm5, %v719_v11, %v721_v9  ;;  %v727_v55 = vsel %vm724_vm5, %v717_v5, %v719_v11 }
 0x379   :  { %v1707_v14 = vpop.permute.xlu0 %749  ;;  %v723_v15 = vpop.permute.xlu1 %722 }
 0x37a   :  { %v725_v16 = vsel %vm724_vm5, %v721_v9, %v723_v15  ;;  %v728_v38 = vsel %vm724_vm5, %v723_v15, %v717_v5  ;;  %v707_v9 = vrot.slane %v1719_v28, %v1636_v45  ;;  %v746_v15 = vmul.f32 %v736_v34, %v727_v55 }
 0x37b   :  { %v748_v18 = vmul.f32 %v744_v13, %v725_v16  ;;  %v745_v51 = vmul.f32 %v732_v36, %v728_v38  ;;  %v876_v13 = vrot.slane %v1693_v8, %v1777_v59  ;;  %v747_v16 = vmul.f32 %v740_v35, %v726_v54 }
 0x37d   :  { %v754_v19 = vpop.permute.xlu0 %753  ;;  %v752_v20 = vpop.permute.xlu1 %751  ;;  %v1310_v21 = vpack.c.bf16 %v748_v18, %v715_v17  ;;  %v1296_v17 = vpack.c.bf16 %v745_v51, %v712_v7  ;;  %v1795_v18 = vsub.s32 7, %v1601_v4 }
 0x37e   :  { %v759_v45 = vsel %vm757_vm6, %v752_v20, %v754_v19 }
 0x37f   :  { %1311 = vmatprep.subr.bf16.mxu0 %v1310_v21  ;;  %v760_v21 = vsel %vm757_vm6, %v1707_v14, %v752_v20  ;;  %v909_v29 = vrot.slane %v1693_v8, %v1795_v18 }
 0x381   :  { %v1711_v22 = vpop.permute.xlu0 %782  ;;  %v1713_v23 = vpop.permute.xlu1 %755 }
 0x382   :  { %v758_v32 = vsel %vm757_vm6, %v754_v19, %v1713_v23 }
 0x383   :  { %v781_v47 = vmul.f32 %v777_v44, %v758_v32 }
 0x385   :  { %v787_v24 = vpop.permute.xlu0 %786  ;;  %v785_v25 = vpop.permute.xlu1 %784 }
 0x386   :  { %v793_v5 = vsel %vm790_vm7, %v1711_v22, %v785_v25  ;;  %v792_v33 = vsel %vm790_vm7, %v785_v25, %v787_v24 }
 0x387   :  { %v812_v36 = vmul.f32 %v802_v46, %v793_v5  ;;  %v779_v46 = vmul.f32 %v769_v39, %v760_v21 }
 0x389   :  { %v1724_v30 = vpop.permute.xlu0 %815  ;;  %v789_v31 = vpop.permute.xlu1 %788  ;;  %v1298_v44 = vpack.c.bf16 %v812_v36, %v779_v46 }
 0x38a   :  { %v791_v11 = vsel %vm790_vm7, %v787_v24, %v789_v31  ;;  %v794_v20 = vsel %vm790_vm7, %v789_v31, %v1711_v22 }
 0x38b   :  { %v814_v37 = vmul.f32 %v810_v50, %v791_v11  ;;  %v813_v50 = vmul.f32 %v806_v48, %v792_v33  ;;  %v811_v7 = vmul.f32 %v798_v49, %v794_v20  ;;  %v872_v48 = vrot.slane %v1719_v28, %v1777_v59  ;;  %v1282_v20 = vld [vmem:[#allocation8 + $0x38] ss:$0 sm:$0xff] }
 0x38d   :  { %v820_v41 = vpop.permute.xlu0 %819  ;;  %v818_v42 = vpop.permute.xlu1 %817 }
 0x38e   :  { %v826_v22 = vsel %vm823_vm8, %v1724_v30, %v818_v42 }
 0x391   :  { %v1772_v56 = vpop.permute.xlu0 %848  ;;  %v822_v58 = vpop.permute.xlu1 %821 }
 0x392   :  { %v827_v19 = vsel %vm823_vm8, %v822_v58, %v1724_v30  ;;  %v824_v39 = vsel %vm823_vm8, %v820_v41, %v822_v58 }
 0x395   :  { %v851_v34 = vpop.permute.xlu1 %850  ;;  %v684_v35 = vpop.permute.xlu0 %683 }
 0x396   :  { %v693_v4 = vsel %vm691_vm4, %v684_v35, %v1688_v3  ;;  %v694_v38 = vsel %vm691_vm4, %v1686_v2, %v684_v35  ;;  %v761_v3 = vsel %vm757_vm6, %v1713_v23, %v1707_v14  ;;  %v825_v2 = vsel %vm823_vm8, %v818_v42, %v820_v41 }
 0x397   :  { %v713_v24 = vmul.f32 %v703_v12, %v694_v38  ;;  %v714_v25 = vmul.f32 %v707_v9, %v693_v4  ;;  %v847_v12 = vmul.f32 %v843_v10, %v827_v19  ;;  %v1314_v9 = vpack.c.bf16 %v814_v37, %v781_v47  ;;  %v1280_v19 = vld [vmem:[#allocation8 + $0x28] ss:$0 sm:$0xff] }
 0x398   :  { %v780_v14 = vmul.f32 %v773_v40, %v759_v45  ;;  %v845_v23 = vmul.f32 %v835_v53, %v825_v2  ;;  %v778_v30 = vmul.f32 %v765_v43, %v761_v3  ;;  %v844_v42 = vmul.f32 %v831_v52, %v826_v22 }
 0x399   :  { %v1312_v31 = vpack.c.bf16 %v747_v16, %v714_v25  ;;  %v855_v51 = vpop.permute.xlu1 %854  ;;  %v853_v54 = vpop.permute.xlu0 %852  ;;  %v1294_v55 = vpack.c.bf16 %v746_v15, %v713_v24  ;;  %v846_v40 = vmul.f32 %v839_v57, %v824_v39  ;;  %v897_v53 = vrot.slane %v1715_v26, %v1795_v18  ;;  %v1281_v24 = vld [vmem:[#allocation8 + $0x30] ss:$0 sm:$0xff]  ;;  %v1279_v25 = vld [vmem:[#allocation8 + $0x20] ss:$0 sm:$0xff] }
 0x39a   :  { %v1316_v41 = vpack.c.bf16 %v813_v50, %v780_v14  ;;  %v1300_v43 = vpack.c.bf16 %v811_v7, %v778_v30  ;;  %v860_v52 = vsel %vm856_vm9, %v855_v51, %v1772_v56  ;;  %v858_v10 = vsel %vm856_vm9, %v851_v34, %v853_v54 }
 0x39b   :  { %1295 = vmatprep.subr.bf16.mxu1 %v1294_v55  ;;  %1313 = vmatpush1.bf16.msra.mxu0 %v1312_v31  ;;  %v1318_v5 = vpack.c.bf16 %v847_v12, %v1651_v62  ;;  %v1302_v11 = vpack.c.bf16 %v845_v23, %v1656_v63  ;;  %v901_v15 = vrot.slane %v1717_v27, %v1795_v18 }
 0x39c   :  { %1297 = vmatpush1.bf16.msra.mxu1 %v1296_v17  ;;  %1315 = vmatprep.subr.bf16.mxu0 %v1314_v9  ;;  %v905_v16 = vrot.slane %v1719_v28, %v1795_v18  ;;  %v1304_v17 = vpack.c.bf16 %v844_v42, %v1643_v60  ;;  %v864_v45 = vrot.slane %v1715_v26, %v1777_v59  ;;  %v1098_v42 = vld [vmem:[#allocation7] sm:$0xff] }
 0x39d   :  { %v884_v49 = vpop.permute.xlu1 %883  ;;  %1299 = vmatprep.subr.bf16.mxu1 %v1298_v44  ;;  %v882_v58 = vpop.permute.xlu0 %881  ;;  %v857_v62 = vsel %vm856_vm9, %v853_v54, %v855_v51  ;;  %v1320_v21 = vpack.c.bf16 %v846_v40, %v1646_v61  ;;  %v859_v63 = vsel %vm856_vm9, %v1772_v56, %v851_v34  ;;  %v880_v28 = vmul.f32 %v876_v13, %v860_v52 }
 0x39e   :  { %v892_v57 = vsel %vm889_vm10, %v882_v58, %v884_v49  ;;  %v878_v60 = vmul.f32 %v868_v0, %v858_v10  ;;  %v879_v34 = vmul.f32 %v872_v48, %v857_v62  ;;  %v877_v27 = vmul.f32 %v864_v45, %v859_v63 }
 0x39f   :  { %1317 = vmatpush1.bf16.msra.mxu0 %v1316_v41  ;;  %v910_v32 = vmul.f32 %v897_v53, %v892_v57 }
 0x3a0   :  { %1301 = vmatpush1.bf16.msra.mxu1 %v1300_v43  ;;  %1319 = vmatprep.subr.bf16.mxu0 %v1318_v5 }
 0x3a1   :  { %v888_v26 = vpop.permute.xlu1 %887  ;;  %1303 = vmatprep.subr.bf16.mxu1 %v1302_v11  ;;  %v886_v18 = vpop.permute.xlu0 %885  ;;  %v1308_v38 = vpack.c.bf16 %v910_v32, %v877_v27 }
 0x3a2   :  { %v893_v33 = vsel %vm889_vm10, %v888_v26, %v882_v58  ;;  %v890_v61 = vsel %vm889_vm10, %v886_v18, %v888_v26  ;;  %v891_v56 = vsel %vm889_vm10, %v884_v49, %v886_v18 }
 0x3a3   :  { %v913_v8 = vmul.f32 %v909_v29, %v893_v33  ;;  %v911_v13 = vmul.f32 %v901_v15, %v891_v56  ;;  %v912_v35 = vmul.f32 %v905_v16, %v890_v61  ;;  %1321 = vmatpush1.bf16.msra.mxu0 %v1320_v21 }
 0x3a4   :  { %1305 = vmatpush1.bf16.msra.mxu1 %v1304_v17 }
 0x3a5   :  { %v1324_v59 = vpack.c.bf16 %v912_v35, %v879_v34  ;;  %v917_v0 = vpop.permute.xlu1 %916  ;;  %v915_v36 = vpop.permute.xlu0 %914  ;;  %v1306_v37 = vpack.c.bf16 %v911_v13, %v878_v60  ;;  %v1322_v4 = vpack.c.bf16 %v913_v8, %v880_v28 }
 0x3a6   :  { %v925_v46 = vsel %vm922_vm11, %v915_v36, %v917_v0 }
 0x3a7   :  { %1307 = vmatprep.subr.bf16.mxu1 %v1306_v37  ;;  %1323 = vmatprep.subr.bf16.mxu0 %v1322_v4  ;;  %v943_v55 = vmul.f32 %v1279_v25, %v925_v46 }
 0x3a8   :  { %1309 = vmatpush1.bf16.msra.mxu1 %v1308_v38  ;;  %1325 = vmatpush1.bf16.msra.mxu0 %v1324_v59 }
 0x3a9   :  { %v921_v3 = vpop.permute.xlu1 %920  ;;  %v919_v47 = vpop.permute.xlu0 %918 }
 0x3aa   :  { %v926_v2 = vsel %vm922_vm11, %v921_v3, %v915_v36  ;;  %v923_v50 = vsel %vm922_vm11, %v919_v47, %v921_v3  ;;  %v924_v22 = vsel %vm922_vm11, %v917_v0, %v919_v47 }
 0x3ab   :  { %v946_v31 = vmul.f32 %v1282_v20, %v926_v2  ;;  %v944_v51 = vmul.f32 %v1280_v19, %v924_v22  ;;  %v945_v54 = vmul.f32 %v1281_v24, %v923_v50 }
 0x3ad   :  { %968 = vmatprep.subr.mxu1 %v944_v51  ;;  %1039 = vmatprep.subr.mxu0 %v946_v31 }
 0x3ae   :  { %969 = vmatpush1.msra.mxu1 %v943_v55  ;;  %1040 = vmatpush1.msra.mxu0 %v945_v54 }
 0x3af   :  { %1283 = vmatmul.mubr.msk.f32.vlgmr.msra.gmra.mrb[6].mxu1 %vm948_vm12, %v947_v6  ;;  %1284 = vmatmul.mubr.msk.f32.vlgmr.msra.gmra.mrb[6].mxu0 %vm948_vm12, %v947_v6 }
 0x3b0   :  { %1166 = vmatprep.mubr.f32.mxu1 %v1491_v1  ;;  %1237 = vmatprep.mubr.f32.mxu0 %v1491_v1 }
 0x482   :  { %v1018_v7 = vpop.f32.mrb[6].mxu1  ;;  %v1089_v39 = vpop.f32.mrb[6].mxu0 }
 0x483   :  { %v1020_v12 = vpop.f32.mrb[7].mxu1  ;;  %v1091_v9 = vpop.f32.mrb[7].mxu0  ;;  %v1094_v44 = vmax.f32 %v1018_v7, 0.0  ;;  %v1096_v30 = vmax.f32 %v1089_v39, 0.0 }
 0x484   :  { %v1095_v14 = vmax.f32 %v1020_v12, 0.0  ;;  %v1097_v23 = vmax.f32 %v1091_v9, 0.0 }
 0x486   :  { %1102 = vmatprep.subr.mxu1 %v1095_v14  ;;  %1173 = vmatprep.subr.mxu0 %v1097_v23 }
 0x487   :  { %1103 = vmatpush1.msra.mxu1 %v1094_v44  ;;  %1174 = vmatpush1.msra.mxu0 %v1096_v30 }
 0x488   :  { %1285 = vmatmul.mubr.msk.f32.vlgmr.msra.gmra.mrb[8].mxu1 %vm81_vm0, %v1098_v42  ;;  %1286 = vmatmul.mubr.msk.f32.vlgmr.msra.gmra.mrb[8].mxu0 %vm81_vm0, %v1098_v42 }
 0x55b   :  { %v1168_v1 = vpop.f32.mrb[8].mxu1  ;;  %v1239_v48 = vpop.f32.mrb[8].mxu0 }
 0x55c   :  { %1244 = vst [vmem:[#allocation10] sm:$0xff] %v1168_v1  ;;  %1246 = vst [vmem:[#allocation10 + $0x10] sm:$0xff] %v1239_v48  ;;  %v1170_v41 = vpop.f32.mrb[9].mxu1  ;;  %v1241_v40 = vpop.f32.mrb[9].mxu0 }
 0x55d   :  { %1245 = vst [vmem:[#allocation10 + $0x8] sm:$0xff] %v1170_v41  ;;  %1247 = vst [vmem:[#allocation10 + $0x18] sm:$0xff] %v1241_v40 }
 0x55e   :  { %1466 = shalt.err (!%p1463_p8)
}
 0x55f   :  { %s1467_s15 = scalar_lea.hbm %s1902_s7, 512 }
 0x560   :  { %p1468_p9 = scmp.ne.s32.totalorder %s1902_s7, %s1467_s15  ;;  %p1471_p10 = scmp.lt.u32.totalorder %s1467_s15, %s1902_s7 }
 0x562   :  { %p1473_p11 = pnand %p1471_p10, %p1468_p9 }
 0x564   :  { %1476 = shalt.err (!%p1473_p11)
}
 0x565   :  { %1257 = dma.vmem_to_hbm [thread:$0]  %s1255_s0, 512, %s1902_s7, [#allocation4]  }
 0x566   :  { %1483 = dma.done.wait [#allocation4], 512  }
 0x567   :  { %1484 = vsyncadd [#allocation4], 4294966784 }
 0x568   :  { %1261 = vsyncpa [#allocation3], 1 }
 0x569   :  { %1262 = vsyncpa [#allocation6], 1 }
 0x56a   :  { %1263 = vsyncpa [#allocation9], 1 }
 0x56b   :  { %1264 = vsyncpa [#allocation4], 1 }

</bundles_post_ra>
